<compile_context>
chip_gen: v6e
topology: v6e:2x2x1
jax: 0.10.0
libtpu: 0.0.40
codegen_flags: <defaults>
</compile_context>

<pallas_src>
import jax
import jax.numpy as jnp
from jax.experimental import pallas as pl
from jax.experimental.pallas import tpu as pltpu

EPS = 1e-5
LANE = 128
TB_MAX = 1024       # max batch-tile rows per grid step


def _round_up(n, m):
    return (n + m - 1) // m * m


def _choose_tb(b):
    """Batch tile size.

    Large batches: >= 2 grid steps (so ("parallel",) can shard across v7x's
    two TensorCores) and 256-aligned M tiles (v6e/v7x MXU); capped at TB_MAX.
    Small batches: a single sublane-aligned step.
    """
    if b > 256:
        return min(TB_MAX, _round_up(pl.cdiv(b, 2), 256))
    return _round_up(b, 8)


def _vmem_limit_bytes(usage_bytes):
    """Scoped-VMEM limit with headroom for Mosaic internal scratch."""
    try:
        cap = int(0.75 * pltpu.get_tpu_info().vmem_capacity_bytes)  # ~48 MiB v7x, ~96 MiB v5e/v6e
    except Exception:
        cap = 48 * 1024 * 1024  # conservative: safe on v7x's 64 MiB/TC
    return min(max(32 * 1024 * 1024, int(1.5 * usage_bytes)), cap)


# ----------------------------------------------------------------------------
# Kernel: 3x (MXU matmul + bias), ReLU between, BN already folded into W/b.
# ----------------------------------------------------------------------------
def _mlp_kernel(x_ref, w1_ref, b1_ref, w2_ref, b2_ref, w3_ref, b3_ref, out_ref):
    # f32 -> bf16 cast happens in VMEM (VPU) instead of an extra XLA HBM pass.
    x = x_ref[...].astype(jnp.bfloat16)
    # block 1: folded Linear+BN -> ReLU   (Dropout = identity in eval mode)
    h = jnp.dot(x, w1_ref[...], preferred_element_type=jnp.float32)
    h = jnp.maximum(h + b1_ref[...], 0.0).astype(jnp.bfloat16)
    # block 2: folded Linear+BN -> ReLU
    h = jnp.dot(h, w2_ref[...], preferred_element_type=jnp.float32)
    h = jnp.maximum(h + b2_ref[...], 0.0).astype(jnp.bfloat16)
    # head: f32 weights (tiny), f32 accumulation, single bf16 rounding on store.
    logits = jnp.dot(h.astype(jnp.float32), w3_ref[...],
                     preferred_element_type=jnp.float32) + b3_ref[...]
    out_ref[...] = logits.astype(out_ref.dtype)
    # TODO(synk): training-mode Dropout (pltpu PRNG) and batch-stat BatchNorm not emitted.


# ----------------------------------------------------------------------------
# Parameter prep: fold BN into Linear layers, cast hidden matmul weights to
# bf16, keep the tiny head in f32 and pad it to a lane-dense width.
# ----------------------------------------------------------------------------
def fold_params(p, num_classes):
    s1 = p["g1"] * jax.lax.rsqrt(p["v1"] + EPS)                  # (1, H1)
    w1 = (p["w1"] * s1).astype(jnp.bfloat16)                     # (Din, H1)
    b1 = ((p["b1"] - p["m1"]) * s1 + p["beta1"]).astype(jnp.float32)

    s2 = p["g2"] * jax.lax.rsqrt(p["v2"] + EPS)
    w2 = (p["w2"] * s2).astype(jnp.bfloat16)
    b2 = ((p["b2"] - p["m2"]) * s2 + p["beta2"]).astype(jnp.float32)

    c_pad = _round_up(max(num_classes, 1), LANE)
    h2 = p["w3"].shape[0]
    w3 = jnp.zeros((h2, c_pad), jnp.float32).at[:, :num_classes].set(p["w3"])
    b3 = jnp.zeros((1, c_pad), jnp.float32).at[:, :num_classes].set(p["b3"])
    return {"w1": w1, "b1": b1, "w2": w2, "b2": b2, "w3": w3, "b3": b3}


# ----------------------------------------------------------------------------
# Wrapper: batch-tiled pallas_call (no input pre-pass, bf16 lane-dense output).
# ----------------------------------------------------------------------------
def feature_classifier_forward(x, folded, num_classes):
    b, din = x.shape
    h1 = folded["w1"].shape[1]
    h2 = folded["w2"].shape[1]
    c_pad = folded["w3"].shape[1]

    tb = _choose_tb(b)
    grid = (pl.cdiv(b, tb),)          # Pallas masks the partial last block
    resident = lambda i: (0, 0)       # weights/biases stay VMEM-resident

    in_specs = [
        pl.BlockSpec((tb, din), lambda i: (i, 0)),   # x: tiled over batch (f32)
        pl.BlockSpec((din, h1), resident),
        pl.BlockSpec((1, h1), resident),
        pl.BlockSpec((h1, h2), resident),
        pl.BlockSpec((1, h2), resident),
        pl.BlockSpec((h2, c_pad), resident),
        pl.BlockSpec((1, c_pad), resident),
    ]
    # NOTE: if hidden dims ever grow, mark the six resident specs
    # single-buffered (pipeline_mode=pl.Buffered(1)); at <0.5 MiB of weights
    # the default double-buffering is irrelevant for VMEM here.
    out_specs = pl.BlockSpec((tb, c_pad), lambda i: (i, 0))

    # VMEM budget: weights (assume double-buffered), double-buffered x/out
    # tiles, single-copy f32 intermediates (compiler scratch).
    w_bytes = (din * h1 + h1 * h2) * 2 + h2 * c_pad * 4 + (h1 + h2 + c_pad) * 4
    tile_bytes = 2 * (tb * din * 4) + 2 * (tb * c_pad * 2)
    scratch_bytes = tb * (h1 + h2) * 4
    vmem_limit = _vmem_limit_bytes(2 * w_bytes + tile_bytes + scratch_bytes)

    rows = grid[0] * tb
    flops = 2 * rows * (din * h1 + h1 * h2 + h2 * c_pad)
    bytes_accessed = w_bytes + b * din * 4 + b * c_pad * 2

    out = pl.pallas_call(
        _mlp_kernel,
        out_shape=jax.ShapeDtypeStruct((b, c_pad), jnp.bfloat16),
        grid=grid,
        in_specs=in_specs,
        out_specs=out_specs,
        compiler_params=pltpu.CompilerParams(
            dimension_semantics=("parallel",),
            vmem_limit_bytes=vmem_limit,
        ),
        cost_estimate=pl.CostEstimate(flops=flops, transcendentals=0,
                                      bytes_accessed=bytes_accessed),
    )(x, folded["w1"], folded["b1"], folded["w2"], folded["b2"],
      folded["w3"], folded["b3"])

    # Cheap column slice + f32 cast for the module's (b, num_classes) API.
    # TODO(synk): fuse a downstream consumer (softmax/argmax/loss) onto the
    # lane-dense bf16 slab instead of slicing, when one exists.
    return out[:, :num_classes].astype(jnp.float32)


# ----------------------------------------------------------------------------
# Synthetic parameters + pure-JAX references.
# ----------------------------------------------------------------------------
def make_params(key, input_dim, hidden_dims, num_classes):
    dims = [input_dim] + list(hidden_dims)
    keys = jax.random.split(key, 8)
    p = {}
    p["w1"] = (jax.random.normal(keys[0], (dims[0], dims[1]), jnp.float32)
               / jnp.sqrt(dims[0]))
    p["b1"] = 0.01 * jax.random.normal(keys[1], (1, dims[1]), jnp.float32)
    p["g1"] = 1.0 + 0.1 * jax.random.normal(keys[2], (1, dims[1]), jnp.float32)
    p["beta1"] = 0.05 * jax.random.normal(keys[3], (1, dims[1]), jnp.float32)
    p["m1"] = 0.1 * jax.random.normal(keys[4], (1, dims[1]), jnp.float32)
    p["v1"] = 1.0 + 0.1 * jax.nn.softplus(
        jax.random.normal(keys[5], (1, dims[1]), jnp.float32))
    p["w2"] = (jax.random.normal(keys[6], (dims[1], dims[2]), jnp.float32)
               / jnp.sqrt(dims[1]))
    p["b2"] = 0.01 * jax.random.normal(keys[7], (1, dims[2]), jnp.float32)
    k2 = jax.random.split(keys[7], 6)
    p["g2"] = 1.0 + 0.1 * jax.random.normal(k2[0], (1, dims[2]), jnp.float32)
    p["beta2"] = 0.05 * jax.random.normal(k2[1], (1, dims[2]), jnp.float32)
    p["m2"] = 0.1 * jax.random.normal(k2[2], (1, dims[2]), jnp.float32)
    p["v2"] = 1.0 + 0.1 * jax.nn.softplus(
        jax.random.normal(k2[3], (1, dims[2]), jnp.float32))
    p["w3"] = (jax.random.normal(k2[4], (dims[2], num_classes), jnp.float32)
               / jnp.sqrt(dims[2]))
    p["b3"] = 0.01 * jax.random.normal(k2[5], (1, num_classes), jnp.float32)
    return p


def reference_forward(x, p):
    """Full-precision eval-mode PyTorch forward (BN running stats, no dropout)."""
    h = x @ p["w1"] + p["b1"]
    h = (h - p["m1"]) * (p["g1"] / jnp.sqrt(p["v1"] + EPS)) + p["beta1"]
    h = jnp.maximum(h, 0.0)
    h = h @ p["w2"] + p["b2"]
    h = (h - p["m2"]) * (p["g2"] / jnp.sqrt(p["v2"] + EPS)) + p["beta2"]
    h = jnp.maximum(h, 0.0)
    return h @ p["w3"] + p["b3"]


def folded_reference(x, fp, num_classes):
    """Pure-JAX forward using the same folded params / dtypes the kernel uses."""
    h = jnp.dot(x.astype(jnp.bfloat16), fp["w1"],
                preferred_element_type=jnp.float32) + fp["b1"]
    h = jnp.maximum(h, 0.0).astype(jnp.bfloat16)
    h = jnp.dot(h, fp["w2"], preferred_element_type=jnp.float32) + fp["b2"]
    h = jnp.maximum(h, 0.0).astype(jnp.bfloat16)
    logits = jnp.dot(h.astype(jnp.float32), fp["w3"],
                     preferred_element_type=jnp.float32,
                     precision=jax.lax.Precision.HIGHEST) + fp["b3"]
    logits = logits.astype(jnp.bfloat16)
    return logits[:, :num_classes].astype(jnp.float32)


if __name__ == "__main__":
    # batch=8, input_dim=32, hidden_dims=[512, 256], num_classes=3
    batch, input_dim, hidden_dims, num_classes = 8, 32, (512, 256), 3

    key = jax.random.PRNGKey(0)
    kx, kp = jax.random.split(key)
    x = jax.random.normal(kx, (batch, input_dim), jnp.float32)
    params = make_params(kp, input_dim, hidden_dims, num_classes)
    folded = fold_params(params, num_classes)

    out = feature_classifier_forward(x, folded, num_classes)
    out = jax.block_until_ready(out)
    assert out.shape == (batch, num_classes)

    # Tight-ish check: kernel vs. pure-JAX forward using identical folded params.
    # (Small slack for MXU f32-matmul pass differences + the final bf16 store rounding.)
    ref_folded = folded_reference(x, folded, num_classes)
    assert jnp.allclose(out, ref_folded, atol=2e-2, rtol=2e-2), \
        "Pallas output mismatch vs folded reference"

    # Loose check: vs. full-precision eval-mode reference (bf16 hidden operands).
    ref_full = reference_forward(x, params)
    assert jnp.allclose(out, ref_full, atol=5e-2, rtol=5e-2), \
        "Pallas output mismatch vs f32 reference"

    print("KERNEL_OK")
</pallas_src>

<mosaic_0001>
module attributes {stable_mosaic.version = 11 : i64} {
  func.func @_mlp_kernel(%arg0: i32, %arg1: memref<8x32xf32, #tpu.memory_space<vmem>>, %arg2: memref<32x512xbf16, #tpu.memory_space<vmem>>, %arg3: memref<1x512xf32, #tpu.memory_space<vmem>>, %arg4: memref<512x256xbf16, #tpu.memory_space<vmem>>, %arg5: memref<1x256xf32, #tpu.memory_space<vmem>>, %arg6: memref<256x128xf32, #tpu.memory_space<vmem>>, %arg7: memref<1x128xf32, #tpu.memory_space<vmem>>, %arg8: memref<8x128xbf16, #tpu.memory_space<vmem>>) attributes {dimension_semantics = [#tpu.dimension_semantics<parallel>], iteration_bounds = array<i64: 1>, scalar_prefetch = 0 : i64, scratch_operands = 0 : i64, tpu.core_type = #tpu.core_type<tc>, window_params = [{transform_indices = @transform_0, window_bounds = array<i64: 8, 32>}, {pipeline_mode = #tpu.pipeline_mode<synchronous>, transform_indices = @transform_1, window_bounds = array<i64: 32, 512>}, {pipeline_mode = #tpu.pipeline_mode<synchronous>, transform_indices = @transform_2, window_bounds = array<i64: 1, 512>}, {pipeline_mode = #tpu.pipeline_mode<synchronous>, transform_indices = @transform_3, window_bounds = array<i64: 512, 256>}, {pipeline_mode = #tpu.pipeline_mode<synchronous>, transform_indices = @transform_4, window_bounds = array<i64: 1, 256>}, {pipeline_mode = #tpu.pipeline_mode<synchronous>, transform_indices = @transform_5, window_bounds = array<i64: 256, 128>}, {pipeline_mode = #tpu.pipeline_mode<synchronous>, transform_indices = @transform_6, window_bounds = array<i64: 1, 128>}, {transform_indices = @transform_7, window_bounds = array<i64: 8, 128>}]} {
    %c0 = arith.constant 0 : index
    %c0_0 = arith.constant 0 : index
    %0 = vector.load %arg1[%c0, %c0_0] : memref<8x32xf32, #tpu.memory_space<vmem>>, vector<8x32xf32>
    %1 = arith.truncf %0 : vector<8x32xf32> to vector<8x32xbf16>
    %c0_1 = arith.constant 0 : index
    %c0_2 = arith.constant 0 : index
    %2 = vector.load %arg2[%c0_1, %c0_2] : memref<32x512xbf16, #tpu.memory_space<vmem>>, vector<32x512xbf16>
    %cst = arith.constant dense<0.000000e+00> : vector<8x512xf32>
    %3 = tpu.matmul %1, %2, %cst {dimension_numbers = #tpu.dot_dimension_numbers<[1], [0], [0], [1], [0, 0, 1, 1], [], []>} : vector<8x32xbf16>, vector<32x512xbf16>, vector<8x512xf32> -> vector<8x512xf32>
    %c0_3 = arith.constant 0 : index
    %c0_4 = arith.constant 0 : index
    %4 = vector.load %arg3[%c0_3, %c0_4] : memref<1x512xf32, #tpu.memory_space<vmem>>, vector<1x512xf32>
    %5 = vector.broadcast %4 : vector<1x512xf32> to vector<8x512xf32>
    %6 = arith.addf %3, %5 : vector<8x512xf32>
    %cst_5 = arith.constant 0.000000e+00 : f32
    %7 = vector.broadcast %cst_5 : f32 to vector<8x512xf32>
    %8 = arith.maximumf %6, %7 : vector<8x512xf32>
    %9 = arith.truncf %8 : vector<8x512xf32> to vector<8x512xbf16>
    %c0_6 = arith.constant 0 : index
    %c0_7 = arith.constant 0 : index
    %10 = vector.load %arg4[%c0_6, %c0_7] : memref<512x256xbf16, #tpu.memory_space<vmem>>, vector<512x256xbf16>
    %cst_8 = arith.constant dense<0.000000e+00> : vector<8x256xf32>
    %11 = tpu.matmul %9, %10, %cst_8 {dimension_numbers = #tpu.dot_dimension_numbers<[1], [0], [0], [1], [0, 0, 1, 1], [], []>} : vector<8x512xbf16>, vector<512x256xbf16>, vector<8x256xf32> -> vector<8x256xf32>
    %c0_9 = arith.constant 0 : index
    %c0_10 = arith.constant 0 : index
    %12 = vector.load %arg5[%c0_9, %c0_10] : memref<1x256xf32, #tpu.memory_space<vmem>>, vector<1x256xf32>
    %13 = vector.broadcast %12 : vector<1x256xf32> to vector<8x256xf32>
    %14 = arith.addf %11, %13 : vector<8x256xf32>
    %cst_11 = arith.constant 0.000000e+00 : f32
    %15 = vector.broadcast %cst_11 : f32 to vector<8x256xf32>
    %16 = arith.maximumf %14, %15 : vector<8x256xf32>
    %17 = arith.truncf %16 : vector<8x256xf32> to vector<8x256xbf16>
    %18 = arith.extf %17 : vector<8x256xbf16> to vector<8x256xf32>
    %c0_12 = arith.constant 0 : index
    %c0_13 = arith.constant 0 : index
    %19 = vector.load %arg6[%c0_12, %c0_13] : memref<256x128xf32, #tpu.memory_space<vmem>>, vector<256x128xf32>
    %cst_14 = arith.constant dense<0.000000e+00> : vector<8x128xf32>
    %20 = tpu.matmul %18, %19, %cst_14 {dimension_numbers = #tpu.dot_dimension_numbers<[1], [0], [0], [1], [0, 0, 1, 1], [], []>} : vector<8x256xf32>, vector<256x128xf32>, vector<8x128xf32> -> vector<8x128xf32>
    %c0_15 = arith.constant 0 : index
    %c0_16 = arith.constant 0 : index
    %21 = vector.load %arg7[%c0_15, %c0_16] : memref<1x128xf32, #tpu.memory_space<vmem>>, vector<1x128xf32>
    %22 = vector.broadcast %21 : vector<1x128xf32> to vector<8x128xf32>
    %23 = arith.addf %20, %22 : vector<8x128xf32>
    %24 = arith.truncf %23 : vector<8x128xf32> to vector<8x128xbf16>
    %c0_17 = arith.constant 0 : index
    %c0_18 = arith.constant 0 : index
    %25 = vector.load %arg8[%c0_17, %c0_18] : memref<8x128xbf16, #tpu.memory_space<vmem>>, vector<8x128xbf16>
    tpu.vector_store %arg8[%c0_17, %c0_18], %24 {strides = array<i32>} : memref<8x128xbf16, #tpu.memory_space<vmem>>, vector<8x128xbf16>,
    return
  }
  func.func @transform_0(%arg0: i32) -> (i32, i32) {
    %c0_i32 = arith.constant 0 : i32
    %c0_i32_0 = arith.constant 0 : i32
    return %arg0, %c0_i32 : i32, i32
  }
  func.func @transform_1(%arg0: i32) -> (i32, i32) {
    %c0_i32 = arith.constant 0 : i32
    %c0_i32_0 = arith.constant 0 : i32
    %c0_i32_1 = arith.constant 0 : i32
    return %c0_i32, %c0_i32_0 : i32, i32
  }
  func.func @transform_2(%arg0: i32) -> (i32, i32) {
    %c0_i32 = arith.constant 0 : i32
    %c0_i32_0 = arith.constant 0 : i32
    %c0_i32_1 = arith.constant 0 : i32
    return %c0_i32, %c0_i32_0 : i32, i32
  }
  func.func @transform_3(%arg0: i32) -> (i32, i32) {
    %c0_i32 = arith.constant 0 : i32
    %c0_i32_0 = arith.constant 0 : i32
    %c0_i32_1 = arith.constant 0 : i32
    return %c0_i32, %c0_i32_0 : i32, i32
  }
  func.func @transform_4(%arg0: i32) -> (i32, i32) {
    %c0_i32 = arith.constant 0 : i32
    %c0_i32_0 = arith.constant 0 : i32
    %c0_i32_1 = arith.constant 0 : i32
    return %c0_i32, %c0_i32_0 : i32, i32
  }
  func.func @transform_5(%arg0: i32) -> (i32, i32) {
    %c0_i32 = arith.constant 0 : i32
    %c0_i32_0 = arith.constant 0 : i32
    %c0_i32_1 = arith.constant 0 : i32
    return %c0_i32, %c0_i32_0 : i32, i32
  }
  func.func @transform_6(%arg0: i32) -> (i32, i32) {
    %c0_i32 = arith.constant 0 : i32
    %c0_i32_0 = arith.constant 0 : i32
    %c0_i32_1 = arith.constant 0 : i32
    return %c0_i32, %c0_i32_0 : i32, i32
  }
  func.func @transform_7(%arg0: i32) -> (i32, i32) {
    %c0_i32 = arith.constant 0 : i32
    %c0_i32_0 = arith.constant 0 : i32
    return %arg0, %c0_i32 : i32, i32
  }
}

</mosaic_0001>

<bundles_post_ra>
// kernel: tpu_custom_call.1
= control target key start
LH: loop header
LB: loop body
LE: loop exit
PB: predicated region body
PF: predicated region fallthrough
CT: control target
= control target key end

     0   :  { %12 = vsyncpa [#allocation3], 0  ;;  %s1324_s0 = inlined_call_operand.hbm [shape: f32[8,32], index: 0, kind: input, shape index: {}]   ;;  %s1325_s1 = inlined_call_operand.hbm [shape: bf16[32,512], index: 1, kind: input, shape index: {}]   ;;  %s1326_s2 = inlined_call_operand.hbm [shape: f32[1,512], index: 2, kind: input, shape index: {}]   ;;  %s1327_s3 = inlined_call_operand.hbm [shape: bf16[512,256], index: 3, kind: input, shape index: {}]   ;;  %s1328_s4 = inlined_call_operand.vmem [shape: f32[1,256], index: 4, kind: input, shape index: {}]   ;;  %s1329_s5 = inlined_call_operand.hbm [shape: f32[256,128], index: 5, kind: input, shape index: {}]   ;;  %s1330_s6 = inlined_call_operand.vmem [shape: f32[1,128], index: 6, kind: input, shape index: {}]   ;;  %s1331_s7 = inlined_call_operand.hbm [shape: bf16[8,128], index: 7, kind: output, shape index: {}]  }
   0x1   :  { %13 = vsyncpa [#allocation6], 0 }
   0x2   :  { %14 = vsyncpa [#allocation9], 0 }
   0x3   :  { %15 = vsyncpa [#allocation4], 0  ;;  %s1227_s24 = smov [#allocation5]  }
   0x4   :  { %s31_s25 = sshll.u32 %s1227_s24, 4  ;;  %s32_s25 = int_to_ptr.vmem [resolvable:$true] %s31_s25 }
   0x5   :  { %s1107_s26 = scalar_lea.vmem %s32_s25, 1024  ;;  %p1112_p1 = scmp.lt.s32.totalorder %s32_s25, %s32_s25 }
   0x6   :  { %p1108_p0 = scmp.ne.s32.totalorder %s32_s25, %s1107_s26  ;;  %p1113_p2 = scmp.lt.s32.totalorder %s1107_s26, %s1107_s26 }
   0x8   :  { %p1114_p3 = por %p1113_p2, %p1112_p1 }
   0xa   :  { %p1115_p4 = pnand %p1114_p3, %p1108_p0 }
   0xc   :  { %1118 = shalt.err (!%p1115_p4)
}
   0xd   :  { %s1228_s27 = smov 256   ;;  %s1229_s28 = smov 16  }
   0xe   :  { %37 = dma.hbm_to_vmem [thread:$0]  %s1325_s1, 1024, %s32_s25, [#allocation6], %s1228_s27, %s1228_s27, %s1229_s28  }
   0xf   :  { %s1230_s8 = smov [#allocation8]  }
  0x10   :  { %s53_s9 = sshll.u32 %s1230_s8, 4  ;;  %s54_s9 = int_to_ptr.vmem [resolvable:$true] %s53_s9 }
  0x11   :  { %s1127_s10 = scalar_lea.vmem %s54_s9, 8192  ;;  %p1132_p6 = scmp.lt.s32.totalorder %s54_s9, %s54_s9 }
  0x12   :  { %p1128_p5 = scmp.ne.s32.totalorder %s54_s9, %s1127_s10  ;;  %p1133_p7 = scmp.lt.s32.totalorder %s1127_s10, %s1127_s10 }
  0x14   :  { %p1134_p8 = por %p1133_p7, %p1132_p6 }
  0x16   :  { %p1135_p9 = pnand %p1134_p8, %p1128_p5 }
  0x18   :  { %1138 = shalt.err (!%p1135_p9)
}
  0x19   :  { %s1231_s11 = smov 128   ;;  %s1232_s12 = smov 8  }
  0x1a   :  { %59 = dma.hbm_to_vmem [thread:$0]  %s1327_s3, 8192, %s54_s9, [#allocation9], %s1231_s11, %s1231_s11, %s1232_s12  }
  0x1b   :  { %s1233_s1 = smov [#allocation2]   ;;  %s1234_s16 = smov [#allocation7]  }
  0x1c   :  { %s22_s15 = sshll.u32 %s1233_s1, 4  ;;  %s44_s17 = sshll.u32 %s1234_s16, 4  ;;  %s23_s15 = int_to_ptr.vmem [resolvable:$true] %s22_s15  ;;  %s45_s17 = int_to_ptr.vmem [resolvable:$true] %s44_s17 }
  0x1d   :  { %s1147_s18 = scalar_lea.vmem %s23_s15, 128  ;;  %p1152_p11 = scmp.lt.s32.totalorder %s23_s15, %s23_s15 }
  0x1e   :  { %p1148_p10 = scmp.ne.s32.totalorder %s23_s15, %s1147_s18  ;;  %p1153_p12 = scmp.lt.s32.totalorder %s1147_s18, %s1147_s18 }
  0x20   :  { %p1154_p13 = por %p1153_p12, %p1152_p11 }
  0x22   :  { %p1155_p0 = pnand %p1154_p13, %p1148_p10 }
  0x24   :  { %1158 = shalt.err (!%p1155_p0)
}
  0x25   :  { %25 = dma.hbm_to_vmem [thread:$0]  %s1324_s0, 128, %s23_s15, [#allocation3]  }
  0x26   :  { %s1167_s21 = scalar_lea.vmem %s45_s17, 64  ;;  %p1172_p2 = scmp.lt.s32.totalorder %s45_s17, %s45_s17 }
  0x27   :  { %p1168_p1 = scmp.ne.s32.totalorder %s45_s17, %s1167_s21  ;;  %p1173_p3 = scmp.lt.s32.totalorder %s1167_s21, %s1167_s21 }
  0x29   :  { %p1174_p4 = por %p1173_p3, %p1172_p2 }
  0x2b   :  { %p1175_p5 = pnand %p1174_p4, %p1168_p1 }
  0x2d   :  { %1178 = shalt.err (!%p1175_p5)
}
  0x2e   :  { %47 = dma.hbm_to_vmem [thread:$0]  %s1326_s2, 64, %s45_s17, [#allocation6]  }
  0x2f   :  { %s1235_s23 = smov [#allocation10]  }
  0x30   :  { %s67_s24 = sshll.u32 %s1235_s23, 4  ;;  %s68_s24 = int_to_ptr.vmem [resolvable:$true] %s67_s24 }
  0x31   :  { %s1187_s25 = scalar_lea.vmem %s68_s24, 4096  ;;  %p1192_p7 = scmp.lt.s32.totalorder %s68_s24, %s68_s24 }
  0x32   :  { %p1188_p6 = scmp.ne.s32.totalorder %s68_s24, %s1187_s25  ;;  %p1193_p8 = scmp.lt.s32.totalorder %s1187_s25, %s1187_s25 }
  0x34   :  { %p1194_p9 = por %p1193_p8, %p1192_p7 }
  0x36   :  { %p1195_p10 = pnand %p1194_p9, %p1188_p6 }
  0x38   :  { %1198 = shalt.err (!%p1195_p10)
}
  0x39   :  { %73 = dma.hbm_to_vmem [thread:$0]  %s1329_s5, 4096, %s68_s24, [#allocation9], %s1231_s11, %s1231_s11, %s1232_s12  }
  0x3a   :  { %1219 = dma.done.wait [#allocation3], 128  }
  0x3b   :  { %1220 = vsyncadd [#allocation3], 4294967168 }
  0x3c   :  { %1221 = dma.done.wait [#allocation6], 1088  }
  0x3d   :  { %1222 = vsyncadd [#allocation6], 4294966208 }
  0x3e   :  { %1223 = dma.done.wait [#allocation9], 12288  }
  0x3f   :  { %1224 = vsyncadd [#allocation9], 4294955008  ;;  %v1236_v0 = vmov 0   ;;  %v991_v1 = vld [vmem:[#allocation5 + $0x24] ss:$16 sps:$4 sm:$0xff]   ;;  %v92_v5 = vld [vmem:[#allocation2] sm:$0xff] }
  0x40   :  { %200 = vmatprep.mubr.bf16.mxu1 %v1236_v0  ;;  %v993_v2 = vld [vmem:[#allocation5 + $0x20] ss:$16 sps:$4 sm:$0xff]   ;;  %180 = vmatprep.subr.bf16.mxu1 %v991_v1  ;;  %v994_v3 = vld [vmem:[#allocation5 + $0x4] ss:$16 sps:$4 sm:$0xff]   ;;  %v999_v6 = vld [vmem:[#allocation5 + $0x2c] ss:$16 sps:$4 sm:$0xff]   ;;  %v93_v8 = vpack.c.bf16 %v92_v5, %v92_v5 }
  0x41   :  { %v996_v4 = vld [vmem:[#allocation5] ss:$16 sps:$4 sm:$0xff]   ;;  %181 = vmatpush1.bf16.msra.mxu1 %v993_v2  ;;  %v997_v7 = vld [vmem:[#allocation5 + $0x28] ss:$16 sps:$4 sm:$0xff]   ;;  %v1005_v10 = vld [vmem:[#allocation8 + $0x70] ss:$8 sps:$4 sm:$0xff]  }
  0x42   :  { %182 = vmatprep.subr.bf16.mxu1 %v994_v3  ;;  %v1003_v9 = vld [vmem:[#allocation8 + $0x74] ss:$8 sps:$4 sm:$0xff]   ;;  %vm164_vm0 = vcmask 261120   ;;  %v1006_v11 = vld [vmem:[#allocation8 + $0x64] ss:$8 sps:$4 sm:$0xff]   ;;  %s1237_s28 = smov [#allocation11]  }
  0x43   :  { %v1002_v12 = vld [vmem:[#allocation5 + $0xc] ss:$16 sps:$4 sm:$0xff]   ;;  %654 = vmatprep.subr.bf16.mxu0 %v1003_v9  ;;  %v1009_v14 = vld [vmem:[#allocation8 + $0x54] ss:$8 sps:$4 sm:$0xff]   ;;  %v1015_v18 = vld [vmem:[#allocation8 + $0x44] ss:$8 sps:$4 sm:$0xff]  }
  0x44   :  { %655 = vmatpush1.bf16.msra.mxu0 %v1005_v10  ;;  %v1008_v13 = vld [vmem:[#allocation8 + $0x60] ss:$8 sps:$4 sm:$0xff]   ;;  %v1000_v15 = vld [vmem:[#allocation5 + $0x8] ss:$16 sps:$4 sm:$0xff]   ;;  %v1014_v17 = vld [vmem:[#allocation8 + $0x50] ss:$8 sps:$4 sm:$0xff]  }
  0x45   :  { %183 = vmatpush1.bf16.msra.mxu1 %v996_v4  ;;  %656 = vmatprep.subr.bf16.mxu0 %v1006_v11  ;;  %v1013_v16 = vld [vmem:[#allocation8 + $0x174] ss:$8 sps:$4 sm:$0xff]   ;;  %v1011_v19 = vld [vmem:[#allocation8 + $0x170] ss:$8 sps:$4 sm:$0xff]   ;;  %v1019_v20 = vld [vmem:[#allocation8 + $0x164] ss:$8 sps:$4 sm:$0xff]  }
  0x46   :  { %221 = vmatprep.subr.bf16.mxu1 %v999_v6  ;;  %v1020_v21 = vld [vmem:[#allocation8 + $0x40] ss:$8 sps:$4 sm:$0xff]   ;;  %v1021_v22 = vld [vmem:[#allocation8 + $0x34] ss:$8 sps:$4 sm:$0xff]   ;;  %v1026_v25 = vld [vmem:[#allocation8 + $0x30] ss:$8 sps:$4 sm:$0xff]  }
  0x47   :  { %v1017_v23 = vld [vmem:[#allocation8 + $0x160] ss:$8 sps:$4 sm:$0xff]   ;;  %v1025_v24 = vld [vmem:[#allocation8 + $0x154] ss:$8 sps:$4 sm:$0xff]   ;;  %v1027_v26 = vld [vmem:[#allocation8 + $0x24] ss:$8 sps:$4 sm:$0xff]  }
  0x48   :  { %878 = vmatmul.mubr.msk.bf16.vlgmr.msra.gmra.mxu1 %vm164_vm0, %v93_v8  ;;  %657 = vmatpush1.bf16.msra.mxu0 %v1008_v13  ;;  %v1023_v27 = vld [vmem:[#allocation8 + $0x150] ss:$8 sps:$4 sm:$0xff]   ;;  %v1031_v28 = vld [vmem:[#allocation8 + $0x144] ss:$8 sps:$4 sm:$0xff]   ;;  %v1032_v29 = vld [vmem:[#allocation8 + $0x20] ss:$8 sps:$4 sm:$0xff]  }
  0x49   :  { %222 = vmatpush1.bf16.msra.mxu1 %v997_v7  ;;  %241 = vmatprep.mubr.bf16.mxu1 %v1236_v0  ;;  %v1033_v30 = vld [vmem:[#allocation8 + $0x14] ss:$8 sps:$4 sm:$0xff]   ;;  %v1029_v31 = vld [vmem:[#allocation8 + $0x140] ss:$8 sps:$4 sm:$0xff]   ;;  %v1038_v33 = vld [vmem:[#allocation8 + $0x10] ss:$8 sps:$4 sm:$0xff]  }
  0x4a   :  { %223 = vmatprep.subr.bf16.mxu1 %v1002_v12  ;;  %658 = vmatprep.subr.bf16.mxu0 %v1009_v14  ;;  %v1037_v32 = vld [vmem:[#allocation8 + $0x134] ss:$8 sps:$4 sm:$0xff]   ;;  %v1039_v34 = vld [vmem:[#allocation8 + $0x4] ss:$8 sps:$4 sm:$0xff]   ;;  %v1035_v35 = vld [vmem:[#allocation8 + $0x130] ss:$8 sps:$4 sm:$0xff]   ;;  %v104_v12 = vlaneseq }
  0x4b   :  { %v1043_v36 = vld [vmem:[#allocation8 + $0x124] ss:$8 sps:$4 sm:$0xff]   ;;  %v1044_v37 = vld [vmem:[#allocation8] ss:$8 sps:$4 sm:$0xff]   ;;  %v1045_v38 = vld [vmem:[#allocation8 + $0xf4] ss:$8 sps:$4 sm:$0xff]  }
  0x4c   :  { %659 = vmatpush1.bf16.msra.mxu0 %v1014_v17  ;;  %v1041_v39 = vld [vmem:[#allocation8 + $0x120] ss:$8 sps:$4 sm:$0xff]   ;;  %v1049_v40 = vld [vmem:[#allocation8 + $0x114] ss:$8 sps:$4 sm:$0xff]   ;;  %v1050_v41 = vld [vmem:[#allocation8 + $0xf0] ss:$8 sps:$4 sm:$0xff]  }
  0x4d   :  { %224 = vmatpush1.bf16.msra.mxu1 %v1000_v15  ;;  %660 = vmatprep.subr.bf16.mxu0 %v1015_v18  ;;  %v1051_v42 = vld [vmem:[#allocation8 + $0xe4] ss:$8 sps:$4 sm:$0xff]   ;;  %v1047_v43 = vld [vmem:[#allocation8 + $0x110] ss:$8 sps:$4 sm:$0xff]   ;;  %v1056_v45 = vld [vmem:[#allocation8 + $0xe0] ss:$8 sps:$4 sm:$0xff]  }
  0x4e   :  { %695 = vmatprep.subr.bf16.mxu1 %v1013_v16  ;;  %v1055_v44 = vld [vmem:[#allocation8 + $0x104] ss:$8 sps:$4 sm:$0xff]   ;;  %v1057_v46 = vld [vmem:[#allocation8 + $0xd4] ss:$8 sps:$4 sm:$0xff]   ;;  %v1053_v47 = vld [vmem:[#allocation8 + $0x100] ss:$8 sps:$4 sm:$0xff]  }
  0x4f   :  { %v1061_v48 = vld [vmem:[#allocation8 + $0x1f4] ss:$8 sps:$4 sm:$0xff]   ;;  %v1062_v49 = vld [vmem:[#allocation8 + $0xd0] ss:$8 sps:$4 sm:$0xff]   ;;  %v1063_v50 = vld [vmem:[#allocation8 + $0xc4] ss:$8 sps:$4 sm:$0xff]  }
  0x50   :  { %879 = vmatmul.mubr.msk.bf16.vlgmr.msra.gmra.mxu1 %vm164_vm0, %v93_v8  ;;  %661 = vmatpush1.bf16.msra.mxu0 %v1020_v21  ;;  %v1059_v51 = vld [vmem:[#allocation8 + $0x1f0] ss:$8 sps:$4 sm:$0xff]   ;;  %v1067_v52 = vld [vmem:[#allocation8 + $0x1e4] ss:$8 sps:$4 sm:$0xff]   ;;  %v1068_v53 = vld [vmem:[#allocation8 + $0xc0] ss:$8 sps:$4 sm:$0xff]  }
  0x51   :  { %696 = vmatpush1.bf16.msra.mxu1 %v1011_v19  ;;  %662 = vmatprep.subr.bf16.mxu0 %v1021_v22  ;;  %v1069_v54 = vld [vmem:[#allocation8 + $0xb4] ss:$8 sps:$4 sm:$0xff]   ;;  %v1065_v55 = vld [vmem:[#allocation8 + $0x1e0] ss:$8 sps:$4 sm:$0xff]   ;;  %v1074_v57 = vld [vmem:[#allocation8 + $0xb0] ss:$8 sps:$4 sm:$0xff]  }
  0x52   :  { %697 = vmatprep.subr.bf16.mxu1 %v1019_v20  ;;  %v1073_v56 = vld [vmem:[#allocation8 + $0x1d4] ss:$8 sps:$4 sm:$0xff]   ;;  %v1075_v58 = vld [vmem:[#allocation8 + $0xa4] ss:$8 sps:$4 sm:$0xff]   ;;  %v1071_v59 = vld [vmem:[#allocation8 + $0x1d0] ss:$8 sps:$4 sm:$0xff]  }
  0x53   :  { %v1079_v60 = vld [vmem:[#allocation8 + $0x1c4] ss:$8 sps:$4 sm:$0xff]   ;;  %v1080_v61 = vld [vmem:[#allocation8 + $0xa0] ss:$8 sps:$4 sm:$0xff]   ;;  %v1081_v63 = vld [vmem:[#allocation8 + $0x94] ss:$8 sps:$4 sm:$0xff]  }
  0x54   :  { %663 = vmatpush1.bf16.msra.mxu0 %v1026_v25  ;;  %v1077_v62 = vld [vmem:[#allocation8 + $0x1c0] ss:$8 sps:$4 sm:$0xff]   ;;  %v1085_v0 = vld [vmem:[#allocation8 + $0x1b4] ss:$8 sps:$4 sm:$0xff]   ;;  %v1083_v1 = vld [vmem:[#allocation8 + $0x1b0] ss:$8 sps:$4 sm:$0xff]  }
  0x55   :  { %698 = vmatpush1.bf16.msra.mxu1 %v1017_v23  ;;  %664 = vmatprep.subr.bf16.mxu0 %v1027_v26  ;;  %v1086_v2 = vld [vmem:[#allocation8 + $0x90] ss:$8 sps:$4 sm:$0xff]   ;;  %v1087_v3 = vld [vmem:[#allocation8 + $0x84] ss:$8 sps:$4 sm:$0xff]   ;;  %v1089_v5 = vld [vmem:[#allocation8 + $0x1a0] ss:$8 sps:$4 sm:$0xff]  }
  0x56   :  { %699 = vmatprep.subr.bf16.mxu1 %v1025_v24  ;;  %v1091_v4 = vld [vmem:[#allocation8 + $0x1a4] ss:$8 sps:$4 sm:$0xff]   ;;  %v1092_v6 = vld [vmem:[#allocation8 + $0x80] ss:$8 sps:$4 sm:$0xff]   ;;  %v1095_v7 = vld [vmem:[#allocation8 + $0x194] ss:$8 sps:$4 sm:$0xff]  }
  0x57   :  { %v1093_v8 = vld [vmem:[#allocation8 + $0x190] ss:$8 sps:$4 sm:$0xff]   ;;  %v1098_v9 = vld [vmem:[#allocation8 + $0x184] ss:$8 sps:$4 sm:$0xff]   ;;  %v1096_v10 = vld [vmem:[#allocation8 + $0x180] ss:$8 sps:$4 sm:$0xff]  }
  0x58   :  { %665 = vmatpush1.bf16.msra.mxu0 %v1032_v29  ;;  %v773_v11 = vld [vmem:[#allocation10 + $0xf8] sm:$0xff]  ;;  %v1301_v13 = vshrl.u32 %v104_v12, 7  ;;  %s859_s29 = sshll.u32 %s1237_s28, 4  ;;  %s860_s29 = int_to_ptr.vmem [resolvable:$true] %s859_s29 }
  0x59   :  { %700 = vmatpush1.bf16.msra.mxu1 %v1023_v27  ;;  %666 = vmatprep.subr.bf16.mxu0 %v1033_v30  ;;  %v102_v15 = vld [vmem:[#allocation7] sm:$0xf]  ;;  %s1199_s30 = scalar_lea.vmem %s860_s29, 64  ;;  %p1204_p12 = scmp.lt.s32.totalorder %s860_s29, %s860_s29 }
  0x5a   :  { %701 = vmatprep.subr.bf16.mxu1 %v1031_v28  ;;  %v106_v14 = vsub.s32 0, %v1301_v13  ;;  %v110_v16 = vsub.s32 1, %v1301_v13  ;;  %v114_v21 = vsub.s32 2, %v1301_v13  ;;  %v118_v24 = vsub.s32 3, %v1301_v13  ;;  %p1200_p11 = scmp.ne.s32.totalorder %s860_s29, %s1199_s30  ;;  %p1205_p13 = scmp.lt.s32.totalorder %s1199_s30, %s1199_s30 }
  0x5c   :  { %667 = vmatpush1.bf16.msra.mxu0 %v1038_v33  ;;  %v107_v17 = vrot.slane %v102_v15, %v106_v14  ;;  %v111_v18 = vrot.slane %v102_v15, %v110_v16  ;;  %v115_v27 = vrot.slane %v102_v15, %v114_v21  ;;  %p1206_p0 = por %p1205_p13, %p1204_p12 }
  0x5d   :  { %702 = vmatpush1.bf16.msra.mxu1 %v1029_v31  ;;  %668 = vmatprep.subr.bf16.mxu0 %v1039_v34  ;;  %v119_v31 = vrot.slane %v102_v15, %v118_v24  ;;  %v757_v34 = vld [vmem:[#allocation10 + $0x78] sm:$0xff] }
  0x5e   :  { %703 = vmatprep.subr.bf16.mxu1 %v1037_v32  ;;  %p1207_p1 = pnand %p1206_p0, %p1200_p11 }
  0x60   :  { %669 = vmatpush1.bf16.msra.mxu0 %v1044_v37 }
  0x61   :  { %704 = vmatpush1.bf16.msra.mxu1 %v1035_v35  ;;  %670 = vmatprep.subr.bf16.mxu0 %v1045_v38  ;;  %v756_v38 = vld [vmem:[#allocation10 + $0x70] sm:$0xff] }
  0x62   :  { %705 = vmatprep.subr.bf16.mxu1 %v1043_v36  ;;  %v772_v36 = vld [vmem:[#allocation10 + $0xf0] sm:$0xff] }
  0x64   :  { %671 = vmatpush2.bf16.msra.mxu0 %v1050_v41 }
  0x65   :  { %706 = vmatpush1.bf16.msra.mxu1 %v1041_v39  ;;  %672 = vmatprep.subr.bf16.mxu0 %v1051_v42 }
  0x66   :  { %707 = vmatprep.subr.bf16.mxu1 %v1049_v40  ;;  %v771_v40 = vld [vmem:[#allocation10 + $0xe8] sm:$0xff] }
  0x68   :  { %673 = vmatpush2.bf16.msra.mxu0 %v1056_v45  ;;  %v770_v45 = vld [vmem:[#allocation10 + $0xe0] sm:$0xff] }
  0x69   :  { %708 = vmatpush1.bf16.msra.mxu1 %v1047_v43  ;;  %674 = vmatprep.subr.bf16.mxu0 %v1057_v46  ;;  %v755_v43 = vld [vmem:[#allocation10 + $0x68] sm:$0xff] }
  0x6a   :  { %709 = vmatprep.subr.bf16.mxu1 %v1055_v44 }
  0x6c   :  { %675 = vmatpush2.bf16.msra.mxu0 %v1062_v49  ;;  %v769_v49 = vld [vmem:[#allocation10 + $0xd8] sm:$0xff] }
  0x6d   :  { %710 = vmatpush1.bf16.msra.mxu1 %v1053_v47  ;;  %676 = vmatprep.subr.bf16.mxu0 %v1063_v50  ;;  %v754_v47 = vld [vmem:[#allocation10 + $0x60] sm:$0xff] }
  0x6e   :  { %711 = vmatprep.subr.bf16.mxu1 %v1061_v48 }
  0x70   :  { %677 = vmatpush2.bf16.msra.mxu0 %v1068_v53  ;;  %v752_v53 = vld [vmem:[#allocation10 + $0x50] sm:$0xff] }
  0x71   :  { %712 = vmatpush2.bf16.msra.mxu1 %v1059_v51  ;;  %678 = vmatprep.subr.bf16.mxu0 %v1069_v54  ;;  %v753_v51 = vld [vmem:[#allocation10 + $0x58] sm:$0xff]  ;;  %v767_v54 = vld [vmem:[#allocation10 + $0xc8] sm:$0xff] }
  0x72   :  { %713 = vmatprep.subr.bf16.mxu1 %v1067_v52  ;;  %v768_v52 = vld [vmem:[#allocation10 + $0xd0] sm:$0xff] }
  0x74   :  { %679 = vmatpush2.bf16.msra.mxu0 %v1074_v57  ;;  %v750_v57 = vld [vmem:[#allocation10 + $0x40] sm:$0xff] }
  0x75   :  { %714 = vmatpush2.bf16.msra.mxu1 %v1065_v55  ;;  %680 = vmatprep.subr.bf16.mxu0 %v1075_v58  ;;  %v751_v55 = vld [vmem:[#allocation10 + $0x48] sm:$0xff]  ;;  %v765_v58 = vld [vmem:[#allocation10 + $0xb8] sm:$0xff] }
  0x76   :  { %715 = vmatprep.subr.bf16.mxu1 %v1073_v56  ;;  %v766_v56 = vld [vmem:[#allocation10 + $0xc0] sm:$0xff] }
  0x78   :  { %681 = vmatpush2.bf16.msra.mxu0 %v1080_v61  ;;  %v748_v61 = vld [vmem:[#allocation10 + $0x30] sm:$0xff] }
  0x79   :  { %716 = vmatpush2.bf16.msra.mxu1 %v1071_v59  ;;  %682 = vmatprep.subr.bf16.mxu0 %v1081_v63  ;;  %v749_v59 = vld [vmem:[#allocation10 + $0x38] sm:$0xff]  ;;  %v747_v63 = vld [vmem:[#allocation10 + $0x28] sm:$0xff] }
  0x7a   :  { %717 = vmatprep.subr.bf16.mxu1 %v1079_v60  ;;  %v764_v60 = vld [vmem:[#allocation10 + $0xb0] sm:$0xff] }
  0x7c   :  { %683 = vmatpush2.bf16.msra.mxu0 %v1086_v2  ;;  %v761_v2 = vld [vmem:[#allocation10 + $0x98] sm:$0xff] }
  0x7d   :  { %718 = vmatpush2.bf16.msra.mxu1 %v1077_v62  ;;  %684 = vmatprep.subr.bf16.mxu0 %v1087_v3  ;;  %v763_v62 = vld [vmem:[#allocation10 + $0xa8] sm:$0xff]  ;;  %v745_v3 = vld [vmem:[#allocation10 + $0x18] sm:$0xff] }
  0x7e   :  { %719 = vmatprep.subr.bf16.mxu1 %v1085_v0  ;;  %v762_v0 = vld [vmem:[#allocation10 + $0xa0] sm:$0xff] }
  0x80   :  { %685 = vmatpush2.bf16.msra.mxu0 %v1092_v6  ;;  %v759_v6 = vld [vmem:[#allocation10 + $0x88] sm:$0xff] }
  0x81   :  { %720 = vmatpush2.bf16.msra.mxu1 %v1083_v1  ;;  %945 = vmatprep.subr.mxu0 %v773_v11  ;;  %v746_v1 = vld [vmem:[#allocation10 + $0x20] sm:$0xff]  ;;  %v322_v11 = vld [vmem:[%s1328_s4] sm:$0x3] }
  0x82   :  { %721 = vmatprep.subr.bf16.mxu1 %v1091_v4  ;;  %v760_v4 = vld [vmem:[#allocation10 + $0x90] sm:$0xff]  ;;  %v327_v15 = vrot.slane %v322_v11, %v106_v14 }
  0x83   :  { %v944_v14 = vld [vmem:[%s1330_s6] ss:$0 sm:$0xff] }
  0x85   :  { %722 = vmatpush2.bf16.msra.mxu1 %v1089_v5  ;;  %v744_v5 = vld [vmem:[#allocation10 + $0x10] sm:$0xff] }
  0x86   :  { %723 = vmatprep.subr.bf16.mxu1 %v1095_v7  ;;  %v743_v7 = vld [vmem:[#allocation10 + $0x8] sm:$0xff] }
  0x89   :  { %724 = vmatpush2.bf16.msra.mxu1 %v1093_v8  ;;  %v758_v8 = vld [vmem:[#allocation10 + $0x80] sm:$0xff] }
  0x8a   :  { %725 = vmatprep.subr.bf16.mxu1 %v1098_v9  ;;  %v742_v9 = vld [vmem:[#allocation10] sm:$0xff] }
  0x8d   :  { %726 = vmatpush2.bf16.msra.mxu1 %v1096_v10 }
 0x108   :  { %v202_v19 = vpop.f32.mrf.mxu1 }
 0x109   :  { %v203_v20 = vadd.f32 %v202_v19, %v107_v17 }
 0x10a   :  { %v204_v22 = vpop.f32.mrf.mxu1 }
 0x10b   :  { %v205_v23 = vadd.f32 %v204_v22, %v111_v18  ;;  %v250_v25 = vmax.f32 %v203_v20, 0.0  ;;  %v331_v18 = vrot.slane %v322_v11, %v110_v16 }
 0x10c   :  { %v206_v26 = vpop.f32.mrf.mxu1 }
 0x10d   :  { %v251_v28 = vmax.f32 %v205_v23, 0.0  ;;  %v254_v32 = vpack.c.bf16 %v250_v25, %v250_v25 }
 0x10e   :  { %v207_v29 = vpop.f32.mrf.mxu1 }
 0x10f   :  { %v255_v30 = vpack.c.bf16 %v251_v28, %v251_v28 }
 0x110   :  { %v243_v33 = vpop.f32.mrf.mxu1 }
 0x111   :  { %v244_v35 = vadd.f32 %v243_v33, %v115_v27  ;;  %686 = vmatprep.mubr.bf16.mxu0 %v255_v30 }
 0x112   :  { %v245_v37 = vpop.f32.mrf.mxu1  ;;  %687 = vmatmul.mubr.bf16.vlgmr.msra.gmra.mxu0 %v254_v32 }
 0x113   :  { %v246_v39 = vadd.f32 %v245_v37, %v119_v31  ;;  %946 = vmatpush3.msra.mxu0 %v757_v34  ;;  %v252_v41 = vmax.f32 %v244_v35, 0.0 }
 0x114   :  { %v247_v42 = vpop.f32.mrf.mxu1  ;;  %947 = vmatprep.subr.mxu0 %v772_v36 }
 0x115   :  { %v253_v44 = vmax.f32 %v246_v39, 0.0  ;;  %948 = vmatpush3.msra.mxu0 %v756_v38  ;;  %v256_v50 = vpack.c.bf16 %v252_v41, %v252_v41 }
 0x116   :  { %v248_v46 = vpop.f32.mrf.mxu1  ;;  %949 = vmatprep.subr.mxu0 %v771_v40 }
 0x117   :  { %v257_v48 = vpack.c.bf16 %v253_v44, %v253_v44  ;;  %950 = vmatpush3.msra.mxu0 %v755_v43 }
 0x118   :  { %951 = vmatprep.subr.mxu0 %v770_v45 }
 0x119   :  { %727 = vmatprep.mubr.bf16.mxu1 %v257_v48  ;;  %952 = vmatpush3.msra.mxu0 %v754_v47 }
 0x11a   :  { %728 = vmatmul.mubr.bf16.vlgmr.msra.gmra.mxu1 %v256_v50  ;;  %953 = vmatprep.subr.mxu0 %v769_v49 }
 0x11b   :  { %954 = vmatpush3.msra.mxu0 %v753_v51 }
 0x11c   :  { %955 = vmatprep.subr.mxu0 %v768_v52 }
 0x11d   :  { %956 = vmatpush3.msra.mxu0 %v752_v53 }
 0x11e   :  { %957 = vmatprep.subr.mxu0 %v767_v54 }
 0x11f   :  { %958 = vmatpush3.msra.mxu0 %v751_v55 }
 0x120   :  { %959 = vmatprep.subr.mxu0 %v766_v56 }
 0x121   :  { %960 = vmatpush3.msra.mxu0 %v750_v57 }
 0x122   :  { %961 = vmatprep.subr.mxu0 %v765_v58 }
 0x123   :  { %962 = vmatpush3.msra.mxu0 %v749_v59 }
 0x124   :  { %963 = vmatprep.subr.mxu0 %v764_v60 }
 0x125   :  { %964 = vmatpush3.msra.mxu0 %v748_v61 }
 0x126   :  { %965 = vmatprep.subr.mxu0 %v763_v62 }
 0x127   :  { %966 = vmatpush3.msra.mxu0 %v747_v63 }
 0x128   :  { %967 = vmatprep.subr.mxu0 %v762_v0 }
 0x129   :  { %968 = vmatpush3.msra.mxu0 %v746_v1 }
 0x12a   :  { %969 = vmatprep.subr.mxu0 %v761_v2 }
 0x12b   :  { %970 = vmatpush3.msra.mxu0 %v745_v3 }
 0x12c   :  { %971 = vmatprep.subr.mxu0 %v760_v4 }
 0x12d   :  { %972 = vmatpush3.msra.mxu0 %v744_v5 }
 0x12e   :  { %973 = vmatprep.subr.mxu0 %v759_v6 }
 0x12f   :  { %974 = vmatpush3.msra.mxu0 %v743_v7 }
 0x130   :  { %975 = vmatprep.subr.mxu0 %v758_v8 }
 0x131   :  { %976 = vmatpush3.msra.mxu0 %v742_v9 }
 0x1d2   :  { %v688_v10 = vpop.f32.mrf.mxu0 }
 0x1d3   :  { %v689_v20 = vadd.f32 %v688_v10, %v327_v15 }
 0x1d4   :  { %v690_v12 = vpop.f32.mrf.mxu0 }
 0x1d5   :  { %v691_v22 = vadd.f32 %v690_v12, %v331_v18 }
 0x1d6   :  { %v692_v17 = vpop.f32.mrf.mxu0 }
 0x1d8   :  { %v693_v19 = vpop.f32.mrf.mxu0 }
 0x1da   :  { %v729_v21 = vpop.f32.mrf.mxu1 }
 0x1db   :  { %v730_v23 = vadd.f32 %v729_v21, %v689_v20 }
 0x1dc   :  { %v731_v24 = vpop.f32.mrf.mxu1 }
 0x1dd   :  { %v732_v25 = vadd.f32 %v731_v24, %v691_v22  ;;  %v736_v28 = vmax.f32 %v730_v23, 0.0 }
 0x1de   :  { %v733_v26 = vpop.f32.mrf.mxu1 }
 0x1df   :  { %v737_v27 = vmax.f32 %v732_v25, 0.0 }
 0x1e0   :  { %v734_v29 = vpop.f32.mrf.mxu1 }
 0x1e1   :  { %845 = vmatprep.mubr.f32.mxu0 %v737_v27 }
 0x1e2   :  { %846 = vmatmul.mubr.f32.vlgmr.msra.gmra.mxu0 %v736_v28 }
 0x2a2   :  { %v977_v30 = vpop.f32.mrf.mxu0 }
 0x2a4   :  { %v978_v13 = vpop.f32.mrf.mxu0 }
 0x2a5   :  { %v979_v16 = vadd.f32 %v978_v13, %v977_v30 }
 0x2a7   :  { %v848_v31 = vadd.f32 %v979_v16, %v944_v14 }
 0x2a9   :  { %v851_v32 = vpack.c.bf16 %v848_v31, %v848_v31 }
 0x2ab   :  { %852 = vst [vmem:[#allocation11] sm:$0xf] %v851_v32 }
 0x2ac   :  { %1210 = shalt.err (!%p1207_p1)
}
 0x2ad   :  { %862 = dma.vmem_to_hbm [thread:$0]  %s860_s29, 64, %s1331_s7, [#allocation4]  }
 0x2ae   :  { %1225 = dma.done.wait [#allocation4], 64  }
 0x2af   :  { %1226 = vsyncadd [#allocation4], 4294967232 }
 0x2b0   :  { %866 = vsyncpa [#allocation3], 1 }
 0x2b1   :  { %867 = vsyncpa [#allocation6], 1 }
 0x2b2   :  { %868 = vsyncpa [#allocation9], 1 }
 0x2b3   :  { %869 = vsyncpa [#allocation4], 1 }

</bundles_post_ra>
